<compile_context>
chip_gen: v6e
topology: v6e:2x2x1
jax: 0.10.0
libtpu: 0.0.40
codegen_flags: <defaults>
</compile_context>

<pallas_src>
import numpy as np
import jax
import jax.numpy as jnp
from jax.experimental import pallas as pl
from jax.experimental.pallas import tpu as pltpu  # noqa: F401  (TPU-specific params if scaled up)

BN_EPS = 1e-5


# ---------------------------------------------------------------------------
# Fused kernel (built per configuration; all loops unrolled at trace time)
# ---------------------------------------------------------------------------

def build_fused_kernel(has_down, k, cout_last):
    """has_down: list[bool] per TCN block; k: kernel_size; cout_last: num_channels[-1]."""

    n_blocks = len(has_down)

    def kernel(*refs):
        o_ref = refs[-1]                       # (classifeature, NM)
        x_ref, sc_ref, sh_ref = refs[0], refs[1], refs[2]

        # eval-mode BatchNorm1d folded to a per-lane affine (lane = (n*M+m)*L + v*C+c)
        h = x_ref[...] * sc_ref[...] + sh_ref[...]          # (T, NM*L)

        def cconv(z, w_ref, b_ref, s_ref):
            # causal dilated conv (== conv + chomp): tap k-1 is unshifted; earlier
            # taps first shift the activation lanes with the precomputed per-segment
            # shift matrix (zero-fill at each batch segment's causal boundary), then
            # channel-mix.  Shift-before-mix is cheaper whenever Cin <= Cout.
            acc = jnp.dot(w_ref[k - 1], z, preferred_element_type=jnp.float32)
            for t in range(k - 1):
                zs = jnp.dot(z, s_ref[t], preferred_element_type=jnp.float32)
                acc = acc + jnp.dot(w_ref[t], zs, preferred_element_type=jnp.float32)
            return acc + b_ref[...]

        idx = 3
        for bi in range(n_blocks):
            w1, b1, w2, b2, S = (refs[idx], refs[idx + 1], refs[idx + 2],
                                 refs[idx + 3], refs[idx + 4])
            idx += 5
            if has_down[bi]:
                wd, bd = refs[idx], refs[idx + 1]
                idx += 2

            h1 = jnp.maximum(cconv(h, w1, b1, S), 0.0)       # ReLU (dropout: eval no-op)
            h2 = jnp.maximum(cconv(h1, w2, b2, S), 0.0)
            if has_down[bi]:
                res = jnp.dot(wd[...], h, preferred_element_type=jnp.float32) + bd[...]
            else:
                res = h                                      # identity residual short-circuit
            h = jnp.maximum(h2 + res, 0.0)                   # (cout, NM*L)

        # fcn1: out[nm, o] = sum_{t', l} Wf[o, t'*L + l] * h[t', nm*L + l] + bf[o]
        # Stage 1 (VPU): U[o, j] = sum_{t'} Wf3[t', o, j] * h[t', j]
        # Stage 2 (MXU): out_T = U @ segsum  (per-batch lane segment sum), + bias.
        wf3, bf, seg = refs[idx], refs[idx + 1], refs[idx + 2]
        U = wf3[0] * h[0:1, :]
        for t in range(1, cout_last):
            U = U + wf3[t] * h[t:t + 1, :]
        o_ref[...] = jnp.dot(U, seg[...], preferred_element_type=jnp.float32) + bf[...]

    return kernel


# ---------------------------------------------------------------------------
# Parameter construction (torch layouts) and one-time packing for the kernel
# ---------------------------------------------------------------------------

def make_params(key, cfg):
    C, V, M = cfg["in_channels"], cfg["num_point"], cfg["num_person"]
    T, k = cfg["num_inputs"], cfg["kernel_size"]
    num_channels = cfg["num_channels"]
    cls = cfg["classifeature"]
    nch = M * V * C

    def nrm(kk, shape, scale=0.05):
        return scale * jax.random.normal(kk, shape, jnp.float32)

    n_blocks = len(num_channels)
    keys = jax.random.split(key, 6 + 6 * n_blocks)
    ki = iter(keys)

    params = {
        "bn_gamma": 1.0 + 0.1 * jax.random.normal(next(ki), (nch,), jnp.float32),
        "bn_beta": 0.1 * jax.random.normal(next(ki), (nch,), jnp.float32),
        "bn_mean": 0.1 * jax.random.normal(next(ki), (nch,), jnp.float32),
        "bn_var": jnp.abs(1.0 + 0.1 * jax.random.normal(next(ki), (nch,), jnp.float32)),
        "fcn1_w": nrm(next(ki), (cls, C * V * num_channels[-1])),
        "fcn1_b": nrm(next(ki), (cls,)),
        "blocks": [],
    }

    cin = T
    for i, cout in enumerate(num_channels):
        blk = {
            "dilation": 2 ** i,
            "w1": nrm(next(ki), (cout, cin, k)),   # torch Conv1d layout (Cout, Cin, k)
            "b1": nrm(next(ki), (cout,)),
            "w2": nrm(next(ki), (cout, cout, k)),
            "b2": nrm(next(ki), (cout,)),
        }
        if cin != cout:
            blk["wd"] = nrm(next(ki), (cout, cin))  # 1x1 downsample conv
            blk["bd"] = nrm(next(ki), (cout,))
        else:
            next(ki); next(ki)                      # keep key stream deterministic
        params["blocks"].append(blk)
        cin = cout
    return params


def _shift_matrix(NM, L, s):
    """(NM*L, NM*L) matrix: (x @ S)[:, nm*L+l] = x[:, nm*L+l-s] if l >= s else 0."""
    n = NM * L
    S = np.zeros((n, n), np.float32)
    for j in range(n):
        if (j % L) >= s:
            S[j - s, j] = 1.0
    return jnp.asarray(S)


def pack_params(params, cfg, N):
    """One-time repacking of torch-layout params into kernel-friendly layouts."""
    C, V, M = cfg["in_channels"], cfg["num_point"], cfg["num_person"]
    k = cfg["kernel_size"]
    assert k >= 2
    L = V * C
    NM = N * M
    NML = NM * L
    cls = cfg["classifeature"]
    cout_last = cfg["num_channels"][-1]

    scale = params["bn_gamma"] / jnp.sqrt(params["bn_var"] + BN_EPS)
    shift = params["bn_beta"] - params["bn_mean"] * scale

    packed = {
        "bn_scale": jnp.tile(scale, N).reshape(1, NML),
        "bn_shift": jnp.tile(shift, N).reshape(1, NML),
        "blocks": [],
    }

    for blk in params["blocks"]:
        d = blk["dilation"]
        pb = {
            "w1": jnp.transpose(blk["w1"], (2, 0, 1)),   # (k, Cout, Cin): tap-major
            "b1": blk["b1"].reshape(-1, 1),
            "w2": jnp.transpose(blk["w2"], (2, 0, 1)),
            "b2": blk["b2"].reshape(-1, 1),
            "S": jnp.stack([_shift_matrix(NM, L, (k - 1 - t) * d) for t in range(k - 1)], 0),
            "has_down": "wd" in blk,
        }
        if "wd" in blk:
            pb["wd"] = blk["wd"]
            pb["bd"] = blk["bd"].reshape(-1, 1)
        packed["blocks"].append(pb)

    # fcn1 weight: (cls, cout_last*L) -> Wf3[t', o, nm*L+l] = Wf[o, t'*L+l]
    WfR = params["fcn1_w"].reshape(cls, cout_last, L)
    packed["wf3"] = jnp.tile(jnp.transpose(WfR, (1, 0, 2)), (1, 1, NM))  # (cout_last, cls, NM*L)
    packed["bf"] = params["fcn1_b"].reshape(cls, 1)
    # per-batch lane segment-sum matrix
    seg = (np.arange(NML)[:, None] // L == np.arange(NM)[None, :]).astype(np.float32)
    packed["seg"] = jnp.asarray(seg)
    packed["has_down"] = [pb["has_down"] for pb in packed["blocks"]]
    return packed


# ---------------------------------------------------------------------------
# Forward (single pallas_call; wrapper only does layout plumbing)
# ---------------------------------------------------------------------------

def encoder_tcn_forward(x, packed, cfg):
    """x: (N, C, T, V, M) -> (N*M, classifeature)."""
    N, C, T, V, M = x.shape
    L = V * C
    NM = N * M
    cls = cfg["classifeature"]
    cout_last = cfg["num_channels"][-1]
    k = cfg["kernel_size"]

    # (N,C,T,V,M) -> (T, N, M, V, C) -> (T, NM*L): TCN channels on sublanes, batch*length on lanes
    x2 = jnp.transpose(x, (2, 0, 4, 3, 1)).reshape(T, NM * L).astype(jnp.float32)

    inputs = [x2, packed["bn_scale"], packed["bn_shift"]]
    for pb in packed["blocks"]:
        inputs += [pb["w1"], pb["b1"], pb["w2"], pb["b2"], pb["S"]]
        if pb["has_down"]:
            inputs += [pb["wd"], pb["bd"]]
    inputs += [packed["wf3"], packed["bf"], packed["seg"]]

    kernel = build_fused_kernel(packed["has_down"], k, cout_last)
    out_t = pl.pallas_call(
        kernel,
        out_shape=jax.ShapeDtypeStruct((cls, NM), jnp.float32),
    )(*inputs)                                  # whole arrays, single invocation, VMEM-resident
    return out_t.T                              # (NM, classifeature) -- layout plumbing only


# ---------------------------------------------------------------------------
# Pure-JAX reference of the same math (numerical sanity check, HIGHEST precision)
# ---------------------------------------------------------------------------

def reference_forward(x, params, cfg):
    N, C, T, V, M = x.shape
    L = V * C
    k = cfg["kernel_size"]
    HI = jax.lax.Precision.HIGHEST

    xb = jnp.transpose(x, (0, 4, 3, 1, 2)).reshape(N, M * V * C, T)
    scale = params["bn_gamma"] / jnp.sqrt(params["bn_var"] + BN_EPS)
    shift = params["bn_beta"] - params["bn_mean"] * scale
    xb = xb * scale[None, :, None] + shift[None, :, None]
    h = jnp.transpose(xb.reshape(N * M, L, T), (0, 2, 1))        # (NM, T, L)

    for blk in params["blocks"]:
        d = blk["dilation"]
        P = (k - 1) * d

        def conv(z, w, b):
            zp = jnp.pad(z, ((0, 0), (0, 0), (P, 0)))
            out = 0.0
            for t in range(k):
                out = out + jnp.einsum("oi,nil->nol", w[:, :, t],
                                       zp[:, :, t * d: t * d + L], precision=HI)
            return out + b[None, :, None]

        h1 = jax.nn.relu(conv(h, blk["w1"], blk["b1"]))
        h2 = jax.nn.relu(conv(h1, blk["w2"], blk["b2"]))
        if "wd" in blk:
            res = jnp.einsum("oi,nil->nol", blk["wd"], h, precision=HI) + blk["bd"][None, :, None]
        else:
            res = h
        h = jax.nn.relu(h2 + res)

    flat = h.reshape(N * M, -1)
    return jnp.dot(flat, params["fcn1_w"].T, precision=HI) + params["fcn1_b"][None, :]


# ---------------------------------------------------------------------------

if __name__ == "__main__":
    cfg = {
        "num_inputs": 8,          # T (frames) == TCN input channels
        "num_channels": [16, 16], # block0: 8->16 (downsample), block1: 16->16 (identity residual)
        "kernel_size": 2,
        "num_person": 1,          # M
        "in_channels": 3,         # C
        "num_point": 4,           # V
        "classifeature": 32,
    }

    key = jax.random.PRNGKey(0)
    kx, kp = jax.random.split(key)
    params = make_params(kp, cfg)

    N = 2
    x = jax.random.normal(
        kx, (N, cfg["in_channels"], cfg["num_inputs"], cfg["num_point"], cfg["num_person"]),
        jnp.float32)

    packed = pack_params(params, cfg, N)

    out = encoder_tcn_forward(x, packed, cfg)
    out = jax.block_until_ready(out)

    ref = jax.block_until_ready(reference_forward(x, params, cfg))
    assert out.shape == (N * cfg["num_person"], cfg["classifeature"]), out.shape
    # Tolerance sized for default MXU precision (bf16 passes) in the kernel vs the
    # HIGHEST-precision f32 reference; structural errors would be O(1), far outside this.
    np.testing.assert_allclose(np.asarray(out), np.asarray(ref), rtol=2e-2, atol=2e-3)

    print("KERNEL_OK")
</pallas_src>

<mosaic_0001>
module attributes {stable_mosaic.version = 11 : i64} {
  func.func @kernel(%arg0: memref<8x24xf32, #tpu.memory_space<vmem>>, %arg1: memref<1x24xf32, #tpu.memory_space<vmem>>, %arg2: memref<1x24xf32, #tpu.memory_space<vmem>>, %arg3: memref<2x16x8xf32, #tpu.memory_space<vmem>>, %arg4: memref<16x1xf32, #tpu.memory_space<vmem>>, %arg5: memref<2x16x16xf32, #tpu.memory_space<vmem>>, %arg6: memref<16x1xf32, #tpu.memory_space<vmem>>, %arg7: memref<1x24x24xf32, #tpu.memory_space<vmem>>, %arg8: memref<16x8xf32, #tpu.memory_space<vmem>>, %arg9: memref<16x1xf32, #tpu.memory_space<vmem>>, %arg10: memref<2x16x16xf32, #tpu.memory_space<vmem>>, %arg11: memref<16x1xf32, #tpu.memory_space<vmem>>, %arg12: memref<2x16x16xf32, #tpu.memory_space<vmem>>, %arg13: memref<16x1xf32, #tpu.memory_space<vmem>>, %arg14: memref<1x24x24xf32, #tpu.memory_space<vmem>>, %arg15: memref<16x32x24xf32, #tpu.memory_space<vmem>>, %arg16: memref<32x1xf32, #tpu.memory_space<vmem>>, %arg17: memref<24x2xf32, #tpu.memory_space<vmem>>, %arg18: memref<32x2xf32, #tpu.memory_space<vmem>>) attributes {dimension_semantics = [], scalar_prefetch = 0 : i64, scratch_operands = 0 : i64, tpu.core_type = #tpu.core_type<tc>} {
    %c0 = arith.constant 0 : index
    %c0_0 = arith.constant 0 : index
    %0 = vector.load %arg0[%c0, %c0_0] : memref<8x24xf32, #tpu.memory_space<vmem>>, vector<8x24xf32>
    %c0_1 = arith.constant 0 : index
    %c0_2 = arith.constant 0 : index
    %1 = vector.load %arg1[%c0_1, %c0_2] : memref<1x24xf32, #tpu.memory_space<vmem>>, vector<1x24xf32>
    %2 = vector.broadcast %1 : vector<1x24xf32> to vector<8x24xf32>
    %3 = arith.mulf %0, %2 : vector<8x24xf32>
    %c0_3 = arith.constant 0 : index
    %c0_4 = arith.constant 0 : index
    %4 = vector.load %arg2[%c0_3, %c0_4] : memref<1x24xf32, #tpu.memory_space<vmem>>, vector<1x24xf32>
    %5 = vector.broadcast %4 : vector<1x24xf32> to vector<8x24xf32>
    %6 = arith.addf %3, %5 : vector<8x24xf32>
    %c1 = arith.constant 1 : index
    %c0_5 = arith.constant 0 : index
    %c0_6 = arith.constant 0 : index
    %7 = vector.load %arg3[%c1, %c0_5, %c0_6] : memref<2x16x8xf32, #tpu.memory_space<vmem>>, vector<1x16x8xf32>
    %8 = vector.shape_cast %7 : vector<1x16x8xf32> to vector<16x8xf32>
    %cst = arith.constant dense<0.000000e+00> : vector<16x24xf32>
    %9 = tpu.matmul %8, %6, %cst {dimension_numbers = #tpu.dot_dimension_numbers<[1], [0], [0], [1], [0, 0, 1, 1], [], []>} : vector<16x8xf32>, vector<8x24xf32>, vector<16x24xf32> -> vector<16x24xf32>
    %c0_7 = arith.constant 0 : index
    %c0_8 = arith.constant 0 : index
    %c0_9 = arith.constant 0 : index
    %10 = vector.load %arg7[%c0_7, %c0_8, %c0_9] : memref<1x24x24xf32, #tpu.memory_space<vmem>>, vector<1x24x24xf32>
    %11 = vector.shape_cast %10 : vector<1x24x24xf32> to vector<24x24xf32>
    %cst_10 = arith.constant dense<0.000000e+00> : vector<8x24xf32>
    %12 = tpu.matmul %6, %11, %cst_10 {dimension_numbers = #tpu.dot_dimension_numbers<[1], [0], [0], [1], [0, 0, 1, 1], [], []>} : vector<8x24xf32>, vector<24x24xf32>, vector<8x24xf32> -> vector<8x24xf32>
    %c0_11 = arith.constant 0 : index
    %c0_12 = arith.constant 0 : index
    %c0_13 = arith.constant 0 : index
    %13 = vector.load %arg3[%c0_11, %c0_12, %c0_13] : memref<2x16x8xf32, #tpu.memory_space<vmem>>, vector<1x16x8xf32>
    %14 = vector.shape_cast %13 : vector<1x16x8xf32> to vector<16x8xf32>
    %cst_14 = arith.constant dense<0.000000e+00> : vector<16x24xf32>
    %15 = tpu.matmul %14, %12, %cst_14 {dimension_numbers = #tpu.dot_dimension_numbers<[1], [0], [0], [1], [0, 0, 1, 1], [], []>} : vector<16x8xf32>, vector<8x24xf32>, vector<16x24xf32> -> vector<16x24xf32>
    %16 = arith.addf %9, %15 : vector<16x24xf32>
    %c0_15 = arith.constant 0 : index
    %c0_16 = arith.constant 0 : index
    %17 = vector.load %arg4[%c0_15, %c0_16] : memref<16x1xf32, #tpu.memory_space<vmem>>, vector<16x1xf32>
    %18 = vector.broadcast %17 : vector<16x1xf32> to vector<16x24xf32>
    %19 = arith.addf %16, %18 : vector<16x24xf32>
    %cst_17 = arith.constant 0.000000e+00 : f32
    %20 = vector.broadcast %cst_17 : f32 to vector<16x24xf32>
    %21 = arith.maximumf %19, %20 : vector<16x24xf32>
    %c1_18 = arith.constant 1 : index
    %c0_19 = arith.constant 0 : index
    %c0_20 = arith.constant 0 : index
    %22 = vector.load %arg5[%c1_18, %c0_19, %c0_20] : memref<2x16x16xf32, #tpu.memory_space<vmem>>, vector<1x16x16xf32>
    %23 = vector.shape_cast %22 : vector<1x16x16xf32> to vector<16x16xf32>
    %cst_21 = arith.constant dense<0.000000e+00> : vector<16x24xf32>
    %24 = tpu.matmul %23, %21, %cst_21 {dimension_numbers = #tpu.dot_dimension_numbers<[1], [0], [0], [1], [0, 0, 1, 1], [], []>} : vector<16x16xf32>, vector<16x24xf32>, vector<16x24xf32> -> vector<16x24xf32>
    %c0_22 = arith.constant 0 : index
    %c0_23 = arith.constant 0 : index
    %c0_24 = arith.constant 0 : index
    %25 = vector.load %arg7[%c0_22, %c0_23, %c0_24] : memref<1x24x24xf32, #tpu.memory_space<vmem>>, vector<1x24x24xf32>
    %26 = vector.shape_cast %25 : vector<1x24x24xf32> to vector<24x24xf32>
    %cst_25 = arith.constant dense<0.000000e+00> : vector<16x24xf32>
    %27 = tpu.matmul %21, %26, %cst_25 {dimension_numbers = #tpu.dot_dimension_numbers<[1], [0], [0], [1], [0, 0, 1, 1], [], []>} : vector<16x24xf32>, vector<24x24xf32>, vector<16x24xf32> -> vector<16x24xf32>
    %c0_26 = arith.constant 0 : index
    %c0_27 = arith.constant 0 : index
    %c0_28 = arith.constant 0 : index
    %28 = vector.load %arg5[%c0_26, %c0_27, %c0_28] : memref<2x16x16xf32, #tpu.memory_space<vmem>>, vector<1x16x16xf32>
    %29 = vector.shape_cast %28 : vector<1x16x16xf32> to vector<16x16xf32>
    %cst_29 = arith.constant dense<0.000000e+00> : vector<16x24xf32>
    %30 = tpu.matmul %29, %27, %cst_29 {dimension_numbers = #tpu.dot_dimension_numbers<[1], [0], [0], [1], [0, 0, 1, 1], [], []>} : vector<16x16xf32>, vector<16x24xf32>, vector<16x24xf32> -> vector<16x24xf32>
    %31 = arith.addf %24, %30 : vector<16x24xf32>
    %c0_30 = arith.constant 0 : index
    %c0_31 = arith.constant 0 : index
    %32 = vector.load %arg6[%c0_30, %c0_31] : memref<16x1xf32, #tpu.memory_space<vmem>>, vector<16x1xf32>
    %33 = vector.broadcast %32 : vector<16x1xf32> to vector<16x24xf32>
    %34 = arith.addf %31, %33 : vector<16x24xf32>
    %cst_32 = arith.constant 0.000000e+00 : f32
    %35 = vector.broadcast %cst_32 : f32 to vector<16x24xf32>
    %36 = arith.maximumf %34, %35 : vector<16x24xf32>
    %c0_33 = arith.constant 0 : index
    %c0_34 = arith.constant 0 : index
    %37 = vector.load %arg8[%c0_33, %c0_34] : memref<16x8xf32, #tpu.memory_space<vmem>>, vector<16x8xf32>
    %cst_35 = arith.constant dense<0.000000e+00> : vector<16x24xf32>
    %38 = tpu.matmul %37, %6, %cst_35 {dimension_numbers = #tpu.dot_dimension_numbers<[1], [0], [0], [1], [0, 0, 1, 1], [], []>} : vector<16x8xf32>, vector<8x24xf32>, vector<16x24xf32> -> vector<16x24xf32>
    %c0_36 = arith.constant 0 : index
    %c0_37 = arith.constant 0 : index
    %39 = vector.load %arg9[%c0_36, %c0_37] : memref<16x1xf32, #tpu.memory_space<vmem>>, vector<16x1xf32>
    %40 = vector.broadcast %39 : vector<16x1xf32> to vector<16x24xf32>
    %41 = arith.addf %38, %40 : vector<16x24xf32>
    %42 = arith.addf %36, %41 : vector<16x24xf32>
    %cst_38 = arith.constant 0.000000e+00 : f32
    %43 = vector.broadcast %cst_38 : f32 to vector<16x24xf32>
    %44 = arith.maximumf %42, %43 : vector<16x24xf32>
    %c1_39 = arith.constant 1 : index
    %c0_40 = arith.constant 0 : index
    %c0_41 = arith.constant 0 : index
    %45 = vector.load %arg10[%c1_39, %c0_40, %c0_41] : memref<2x16x16xf32, #tpu.memory_space<vmem>>, vector<1x16x16xf32>
    %46 = vector.shape_cast %45 : vector<1x16x16xf32> to vector<16x16xf32>
    %cst_42 = arith.constant dense<0.000000e+00> : vector<16x24xf32>
    %47 = tpu.matmul %46, %44, %cst_42 {dimension_numbers = #tpu.dot_dimension_numbers<[1], [0], [0], [1], [0, 0, 1, 1], [], []>} : vector<16x16xf32>, vector<16x24xf32>, vector<16x24xf32> -> vector<16x24xf32>
    %c0_43 = arith.constant 0 : index
    %c0_44 = arith.constant 0 : index
    %c0_45 = arith.constant 0 : index
    %48 = vector.load %arg14[%c0_43, %c0_44, %c0_45] : memref<1x24x24xf32, #tpu.memory_space<vmem>>, vector<1x24x24xf32>
    %49 = vector.shape_cast %48 : vector<1x24x24xf32> to vector<24x24xf32>
    %cst_46 = arith.constant dense<0.000000e+00> : vector<16x24xf32>
    %50 = tpu.matmul %44, %49, %cst_46 {dimension_numbers = #tpu.dot_dimension_numbers<[1], [0], [0], [1], [0, 0, 1, 1], [], []>} : vector<16x24xf32>, vector<24x24xf32>, vector<16x24xf32> -> vector<16x24xf32>
    %c0_47 = arith.constant 0 : index
    %c0_48 = arith.constant 0 : index
    %c0_49 = arith.constant 0 : index
    %51 = vector.load %arg10[%c0_47, %c0_48, %c0_49] : memref<2x16x16xf32, #tpu.memory_space<vmem>>, vector<1x16x16xf32>
    %52 = vector.shape_cast %51 : vector<1x16x16xf32> to vector<16x16xf32>
    %cst_50 = arith.constant dense<0.000000e+00> : vector<16x24xf32>
    %53 = tpu.matmul %52, %50, %cst_50 {dimension_numbers = #tpu.dot_dimension_numbers<[1], [0], [0], [1], [0, 0, 1, 1], [], []>} : vector<16x16xf32>, vector<16x24xf32>, vector<16x24xf32> -> vector<16x24xf32>
    %54 = arith.addf %47, %53 : vector<16x24xf32>
    %c0_51 = arith.constant 0 : index
    %c0_52 = arith.constant 0 : index
    %55 = vector.load %arg11[%c0_51, %c0_52] : memref<16x1xf32, #tpu.memory_space<vmem>>, vector<16x1xf32>
    %56 = vector.broadcast %55 : vector<16x1xf32> to vector<16x24xf32>
    %57 = arith.addf %54, %56 : vector<16x24xf32>
    %cst_53 = arith.constant 0.000000e+00 : f32
    %58 = vector.broadcast %cst_53 : f32 to vector<16x24xf32>
    %59 = arith.maximumf %57, %58 : vector<16x24xf32>
    %c1_54 = arith.constant 1 : index
    %c0_55 = arith.constant 0 : index
    %c0_56 = arith.constant 0 : index
    %60 = vector.load %arg12[%c1_54, %c0_55, %c0_56] : memref<2x16x16xf32, #tpu.memory_space<vmem>>, vector<1x16x16xf32>
    %61 = vector.shape_cast %60 : vector<1x16x16xf32> to vector<16x16xf32>
    %cst_57 = arith.constant dense<0.000000e+00> : vector<16x24xf32>
    %62 = tpu.matmul %61, %59, %cst_57 {dimension_numbers = #tpu.dot_dimension_numbers<[1], [0], [0], [1], [0, 0, 1, 1], [], []>} : vector<16x16xf32>, vector<16x24xf32>, vector<16x24xf32> -> vector<16x24xf32>
    %c0_58 = arith.constant 0 : index
    %c0_59 = arith.constant 0 : index
    %c0_60 = arith.constant 0 : index
    %63 = vector.load %arg14[%c0_58, %c0_59, %c0_60] : memref<1x24x24xf32, #tpu.memory_space<vmem>>, vector<1x24x24xf32>
    %64 = vector.shape_cast %63 : vector<1x24x24xf32> to vector<24x24xf32>
    %cst_61 = arith.constant dense<0.000000e+00> : vector<16x24xf32>
    %65 = tpu.matmul %59, %64, %cst_61 {dimension_numbers = #tpu.dot_dimension_numbers<[1], [0], [0], [1], [0, 0, 1, 1], [], []>} : vector<16x24xf32>, vector<24x24xf32>, vector<16x24xf32> -> vector<16x24xf32>
    %c0_62 = arith.constant 0 : index
    %c0_63 = arith.constant 0 : index
    %c0_64 = arith.constant 0 : index
    %66 = vector.load %arg12[%c0_62, %c0_63, %c0_64] : memref<2x16x16xf32, #tpu.memory_space<vmem>>, vector<1x16x16xf32>
    %67 = vector.shape_cast %66 : vector<1x16x16xf32> to vector<16x16xf32>
    %cst_65 = arith.constant dense<0.000000e+00> : vector<16x24xf32>
    %68 = tpu.matmul %67, %65, %cst_65 {dimension_numbers = #tpu.dot_dimension_numbers<[1], [0], [0], [1], [0, 0, 1, 1], [], []>} : vector<16x16xf32>, vector<16x24xf32>, vector<16x24xf32> -> vector<16x24xf32>
    %69 = arith.addf %62, %68 : vector<16x24xf32>
    %c0_66 = arith.constant 0 : index
    %c0_67 = arith.constant 0 : index
    %70 = vector.load %arg13[%c0_66, %c0_67] : memref<16x1xf32, #tpu.memory_space<vmem>>, vector<16x1xf32>
    %71 = vector.broadcast %70 : vector<16x1xf32> to vector<16x24xf32>
    %72 = arith.addf %69, %71 : vector<16x24xf32>
    %cst_68 = arith.constant 0.000000e+00 : f32
    %73 = vector.broadcast %cst_68 : f32 to vector<16x24xf32>
    %74 = arith.maximumf %72, %73 : vector<16x24xf32>
    %75 = arith.addf %74, %44 : vector<16x24xf32>
    %cst_69 = arith.constant 0.000000e+00 : f32
    %76 = vector.broadcast %cst_69 : f32 to vector<16x24xf32>
    %77 = arith.maximumf %75, %76 : vector<16x24xf32>
    %c0_70 = arith.constant 0 : index
    %c0_71 = arith.constant 0 : index
    %c0_72 = arith.constant 0 : index
    %78 = vector.load %arg15[%c0_70, %c0_71, %c0_72] : memref<16x32x24xf32, #tpu.memory_space<vmem>>, vector<1x32x24xf32>
    %79 = vector.shape_cast %78 : vector<1x32x24xf32> to vector<32x24xf32>
    %80 = vector.extract_strided_slice %77 {offsets = [0, 0], sizes = [1, 24], strides = [1, 1]} : vector<16x24xf32> to vector<1x24xf32>
    %81 = vector.broadcast %80 : vector<1x24xf32> to vector<32x24xf32>
    %82 = arith.mulf %79, %81 : vector<32x24xf32>
    %c1_73 = arith.constant 1 : index
    %c0_74 = arith.constant 0 : index
    %c0_75 = arith.constant 0 : index
    %83 = vector.load %arg15[%c1_73, %c0_74, %c0_75] : memref<16x32x24xf32, #tpu.memory_space<vmem>>, vector<1x32x24xf32>
    %84 = vector.shape_cast %83 : vector<1x32x24xf32> to vector<32x24xf32>
    %85 = vector.extract_strided_slice %77 {offsets = [1, 0], sizes = [1, 24], strides = [1, 1]} : vector<16x24xf32> to vector<1x24xf32>
    %86 = vector.broadcast %85 : vector<1x24xf32> to vector<32x24xf32>
    %87 = arith.mulf %84, %86 : vector<32x24xf32>
    %88 = arith.addf %82, %87 : vector<32x24xf32>
    %c2 = arith.constant 2 : index
    %c0_76 = arith.constant 0 : index
    %c0_77 = arith.constant 0 : index
    %89 = vector.load %arg15[%c2, %c0_76, %c0_77] : memref<16x32x24xf32, #tpu.memory_space<vmem>>, vector<1x32x24xf32>
    %90 = vector.shape_cast %89 : vector<1x32x24xf32> to vector<32x24xf32>
    %91 = vector.extract_strided_slice %77 {offsets = [2, 0], sizes = [1, 24], strides = [1, 1]} : vector<16x24xf32> to vector<1x24xf32>
    %92 = vector.broadcast %91 : vector<1x24xf32> to vector<32x24xf32>
    %93 = arith.mulf %90, %92 : vector<32x24xf32>
    %94 = arith.addf %88, %93 : vector<32x24xf32>
    %c3 = arith.constant 3 : index
    %c0_78 = arith.constant 0 : index
    %c0_79 = arith.constant 0 : index
    %95 = vector.load %arg15[%c3, %c0_78, %c0_79] : memref<16x32x24xf32, #tpu.memory_space<vmem>>, vector<1x32x24xf32>
    %96 = vector.shape_cast %95 : vector<1x32x24xf32> to vector<32x24xf32>
    %97 = vector.extract_strided_slice %77 {offsets = [3, 0], sizes = [1, 24], strides = [1, 1]} : vector<16x24xf32> to vector<1x24xf32>
    %98 = vector.broadcast %97 : vector<1x24xf32> to vector<32x24xf32>
    %99 = arith.mulf %96, %98 : vector<32x24xf32>
    %100 = arith.addf %94, %99 : vector<32x24xf32>
    %c4 = arith.constant 4 : index
    %c0_80 = arith.constant 0 : index
    %c0_81 = arith.constant 0 : index
    %101 = vector.load %arg15[%c4, %c0_80, %c0_81] : memref<16x32x24xf32, #tpu.memory_space<vmem>>, vector<1x32x24xf32>
    %102 = vector.shape_cast %101 : vector<1x32x24xf32> to vector<32x24xf32>
    %103 = vector.extract_strided_slice %77 {offsets = [4, 0], sizes = [1, 24], strides = [1, 1]} : vector<16x24xf32> to vector<1x24xf32>
    %104 = vector.broadcast %103 : vector<1x24xf32> to vector<32x24xf32>
    %105 = arith.mulf %102, %104 : vector<32x24xf32>
    %106 = arith.addf %100, %105 : vector<32x24xf32>
    %c5 = arith.constant 5 : index
    %c0_82 = arith.constant 0 : index
    %c0_83 = arith.constant 0 : index
    %107 = vector.load %arg15[%c5, %c0_82, %c0_83] : memref<16x32x24xf32, #tpu.memory_space<vmem>>, vector<1x32x24xf32>
    %108 = vector.shape_cast %107 : vector<1x32x24xf32> to vector<32x24xf32>
    %109 = vector.extract_strided_slice %77 {offsets = [5, 0], sizes = [1, 24], strides = [1, 1]} : vector<16x24xf32> to vector<1x24xf32>
    %110 = vector.broadcast %109 : vector<1x24xf32> to vector<32x24xf32>
    %111 = arith.mulf %108, %110 : vector<32x24xf32>
    %112 = arith.addf %106, %111 : vector<32x24xf32>
    %c6 = arith.constant 6 : index
    %c0_84 = arith.constant 0 : index
    %c0_85 = arith.constant 0 : index
    %113 = vector.load %arg15[%c6, %c0_84, %c0_85] : memref<16x32x24xf32, #tpu.memory_space<vmem>>, vector<1x32x24xf32>
    %114 = vector.shape_cast %113 : vector<1x32x24xf32> to vector<32x24xf32>
    %115 = vector.extract_strided_slice %77 {offsets = [6, 0], sizes = [1, 24], strides = [1, 1]} : vector<16x24xf32> to vector<1x24xf32>
    %116 = vector.broadcast %115 : vector<1x24xf32> to vector<32x24xf32>
    %117 = arith.mulf %114, %116 : vector<32x24xf32>
    %118 = arith.addf %112, %117 : vector<32x24xf32>
    %c7 = arith.constant 7 : index
    %c0_86 = arith.constant 0 : index
    %c0_87 = arith.constant 0 : index
    %119 = vector.load %arg15[%c7, %c0_86, %c0_87] : memref<16x32x24xf32, #tpu.memory_space<vmem>>, vector<1x32x24xf32>
    %120 = vector.shape_cast %119 : vector<1x32x24xf32> to vector<32x24xf32>
    %121 = vector.extract_strided_slice %77 {offsets = [7, 0], sizes = [1, 24], strides = [1, 1]} : vector<16x24xf32> to vector<1x24xf32>
    %122 = vector.broadcast %121 : vector<1x24xf32> to vector<32x24xf32>
    %123 = arith.mulf %120, %122 : vector<32x24xf32>
    %124 = arith.addf %118, %123 : vector<32x24xf32>
    %c8 = arith.constant 8 : index
    %c0_88 = arith.constant 0 : index
    %c0_89 = arith.constant 0 : index
    %125 = vector.load %arg15[%c8, %c0_88, %c0_89] : memref<16x32x24xf32, #tpu.memory_space<vmem>>, vector<1x32x24xf32>
    %126 = vector.shape_cast %125 : vector<1x32x24xf32> to vector<32x24xf32>
    %127 = vector.extract_strided_slice %77 {offsets = [8, 0], sizes = [1, 24], strides = [1, 1]} : vector<16x24xf32> to vector<1x24xf32>
    %128 = vector.broadcast %127 : vector<1x24xf32> to vector<32x24xf32>
    %129 = arith.mulf %126, %128 : vector<32x24xf32>
    %130 = arith.addf %124, %129 : vector<32x24xf32>
    %c9 = arith.constant 9 : index
    %c0_90 = arith.constant 0 : index
    %c0_91 = arith.constant 0 : index
    %131 = vector.load %arg15[%c9, %c0_90, %c0_91] : memref<16x32x24xf32, #tpu.memory_space<vmem>>, vector<1x32x24xf32>
    %132 = vector.shape_cast %131 : vector<1x32x24xf32> to vector<32x24xf32>
    %133 = vector.extract_strided_slice %77 {offsets = [9, 0], sizes = [1, 24], strides = [1, 1]} : vector<16x24xf32> to vector<1x24xf32>
    %134 = vector.broadcast %133 : vector<1x24xf32> to vector<32x24xf32>
    %135 = arith.mulf %132, %134 : vector<32x24xf32>
    %136 = arith.addf %130, %135 : vector<32x24xf32>
    %c10 = arith.constant 10 : index
    %c0_92 = arith.constant 0 : index
    %c0_93 = arith.constant 0 : index
    %137 = vector.load %arg15[%c10, %c0_92, %c0_93] : memref<16x32x24xf32, #tpu.memory_space<vmem>>, vector<1x32x24xf32>
    %138 = vector.shape_cast %137 : vector<1x32x24xf32> to vector<32x24xf32>
    %139 = vector.extract_strided_slice %77 {offsets = [10, 0], sizes = [1, 24], strides = [1, 1]} : vector<16x24xf32> to vector<1x24xf32>
    %140 = vector.broadcast %139 : vector<1x24xf32> to vector<32x24xf32>
    %141 = arith.mulf %138, %140 : vector<32x24xf32>
    %142 = arith.addf %136, %141 : vector<32x24xf32>
    %c11 = arith.constant 11 : index
    %c0_94 = arith.constant 0 : index
    %c0_95 = arith.constant 0 : index
    %143 = vector.load %arg15[%c11, %c0_94, %c0_95] : memref<16x32x24xf32, #tpu.memory_space<vmem>>, vector<1x32x24xf32>
    %144 = vector.shape_cast %143 : vector<1x32x24xf32> to vector<32x24xf32>
    %145 = vector.extract_strided_slice %77 {offsets = [11, 0], sizes = [1, 24], strides = [1, 1]} : vector<16x24xf32> to vector<1x24xf32>
    %146 = vector.broadcast %145 : vector<1x24xf32> to vector<32x24xf32>
    %147 = arith.mulf %144, %146 : vector<32x24xf32>
    %148 = arith.addf %142, %147 : vector<32x24xf32>
    %c12 = arith.constant 12 : index
    %c0_96 = arith.constant 0 : index
    %c0_97 = arith.constant 0 : index
    %149 = vector.load %arg15[%c12, %c0_96, %c0_97] : memref<16x32x24xf32, #tpu.memory_space<vmem>>, vector<1x32x24xf32>
    %150 = vector.shape_cast %149 : vector<1x32x24xf32> to vector<32x24xf32>
    %151 = vector.extract_strided_slice %77 {offsets = [12, 0], sizes = [1, 24], strides = [1, 1]} : vector<16x24xf32> to vector<1x24xf32>
    %152 = vector.broadcast %151 : vector<1x24xf32> to vector<32x24xf32>
    %153 = arith.mulf %150, %152 : vector<32x24xf32>
    %154 = arith.addf %148, %153 : vector<32x24xf32>
    %c13 = arith.constant 13 : index
    %c0_98 = arith.constant 0 : index
    %c0_99 = arith.constant 0 : index
    %155 = vector.load %arg15[%c13, %c0_98, %c0_99] : memref<16x32x24xf32, #tpu.memory_space<vmem>>, vector<1x32x24xf32>
    %156 = vector.shape_cast %155 : vector<1x32x24xf32> to vector<32x24xf32>
    %157 = vector.extract_strided_slice %77 {offsets = [13, 0], sizes = [1, 24], strides = [1, 1]} : vector<16x24xf32> to vector<1x24xf32>
    %158 = vector.broadcast %157 : vector<1x24xf32> to vector<32x24xf32>
    %159 = arith.mulf %156, %158 : vector<32x24xf32>
    %160 = arith.addf %154, %159 : vector<32x24xf32>
    %c14 = arith.constant 14 : index
    %c0_100 = arith.constant 0 : index
    %c0_101 = arith.constant 0 : index
    %161 = vector.load %arg15[%c14, %c0_100, %c0_101] : memref<16x32x24xf32, #tpu.memory_space<vmem>>, vector<1x32x24xf32>
    %162 = vector.shape_cast %161 : vector<1x32x24xf32> to vector<32x24xf32>
    %163 = vector.extract_strided_slice %77 {offsets = [14, 0], sizes = [1, 24], strides = [1, 1]} : vector<16x24xf32> to vector<1x24xf32>
    %164 = vector.broadcast %163 : vector<1x24xf32> to vector<32x24xf32>
    %165 = arith.mulf %162, %164 : vector<32x24xf32>
    %166 = arith.addf %160, %165 : vector<32x24xf32>
    %c15 = arith.constant 15 : index
    %c0_102 = arith.constant 0 : index
    %c0_103 = arith.constant 0 : index
    %167 = vector.load %arg15[%c15, %c0_102, %c0_103] : memref<16x32x24xf32, #tpu.memory_space<vmem>>, vector<1x32x24xf32>
    %168 = vector.shape_cast %167 : vector<1x32x24xf32> to vector<32x24xf32>
    %169 = vector.extract_strided_slice %77 {offsets = [15, 0], sizes = [1, 24], strides = [1, 1]} : vector<16x24xf32> to vector<1x24xf32>
    %170 = vector.broadcast %169 : vector<1x24xf32> to vector<32x24xf32>
    %171 = arith.mulf %168, %170 : vector<32x24xf32>
    %172 = arith.addf %166, %171 : vector<32x24xf32>
    %c0_104 = arith.constant 0 : index
    %c0_105 = arith.constant 0 : index
    %173 = vector.load %arg17[%c0_104, %c0_105] : memref<24x2xf32, #tpu.memory_space<vmem>>, vector<24x2xf32>
    %cst_106 = arith.constant dense<0.000000e+00> : vector<32x2xf32>
    %174 = tpu.matmul %172, %173, %cst_106 {dimension_numbers = #tpu.dot_dimension_numbers<[1], [0], [0], [1], [0, 0, 1, 1], [], []>} : vector<32x24xf32>, vector<24x2xf32>, vector<32x2xf32> -> vector<32x2xf32>
    %c0_107 = arith.constant 0 : index
    %c0_108 = arith.constant 0 : index
    %175 = vector.load %arg16[%c0_107, %c0_108] : memref<32x1xf32, #tpu.memory_space<vmem>>, vector<32x1xf32>
    %176 = vector.broadcast %175 : vector<32x1xf32> to vector<32x2xf32>
    %177 = arith.addf %174, %176 : vector<32x2xf32>
    %c0_109 = arith.constant 0 : index
    %c0_110 = arith.constant 0 : index
    %178 = vector.load %arg18[%c0_109, %c0_110] : memref<32x2xf32, #tpu.memory_space<vmem>>, vector<32x2xf32>
    tpu.vector_store %arg18[%c0_109, %c0_110], %177 {strides = array<i32>} : memref<32x2xf32, #tpu.memory_space<vmem>>, vector<32x2xf32>,
    return
  }
}

</mosaic_0001>

<bundles_post_ra>
// kernel: tpu_custom_call.1
= control target key start
LH: loop header
LB: loop body
LE: loop exit
PB: predicated region body
PF: predicated region fallthrough
CT: control target
= control target key end

     0   :  { %v1904_v0 = vmov 0.0   ;;  %vm1905_vm0 = vmmov 0   ;;  %vm82_vm1 = vcmask 195584   ;;  %vm158_vm2 = vcmask 64512   ;;  %s2506_s7 = inlined_call_operand.vmem [shape: f32[1,24,24], index: 7, kind: input, shape index: {}]   ;;  %s2507_s0 = inlined_call_operand.vmem [shape: f32[8,24], index: 0, kind: input, shape index: {}]   ;;  %s2508_s1 = inlined_call_operand.vmem [shape: f32[1,24], index: 1, kind: input, shape index: {}]   ;;  %s2509_s2 = inlined_call_operand.vmem [shape: f32[1,24], index: 2, kind: input, shape index: {}]   ;;  %s2510_s3 = inlined_call_operand.vmem [shape: f32[2,16,8], index: 3, kind: input, shape index: {}]   ;;  %s2511_s4 = inlined_call_operand.vmem [shape: f32[16,1], index: 4, kind: input, shape index: {}]   ;;  %s2512_s9 = inlined_call_operand.vmem [shape: f32[16,1], index: 9, kind: input, shape index: {}]   ;;  %s2513_s11 = inlined_call_operand.vmem [shape: f32[16,1], index: 11, kind: input, shape index: {}]   ;;  %s2514_s13 = inlined_call_operand.vmem [shape: f32[16,1], index: 13, kind: input, shape index: {}]   ;;  %s2515_s16 = inlined_call_operand.vmem [shape: f32[32,1], index: 16, kind: input, shape index: {}]   ;;  %s2516_s5 = inlined_call_operand.vmem [shape: f32[2,16,16], index: 5, kind: input, shape index: {}]   ;;  %s2517_s6 = inlined_call_operand.vmem [shape: f32[16,1], index: 6, kind: input, shape index: {}]   ;;  %s2518_s8 = inlined_call_operand.vmem [shape: f32[16,8], index: 8, kind: input, shape index: {}]   ;;  %s2519_s14 = inlined_call_operand.vmem [shape: f32[1,24,24], index: 14, kind: input, shape index: {}]   ;;  %s2520_s10 = inlined_call_operand.vmem [shape: f32[2,16,16], index: 10, kind: input, shape index: {}]   ;;  %s2521_s12 = inlined_call_operand.vmem [shape: f32[2,16,16], index: 12, kind: input, shape index: {}]   ;;  %s2522_s17 = inlined_call_operand.vmem [shape: f32[24,2], index: 17, kind: input, shape index: {}]   ;;  %s2523_s15 = inlined_call_operand.vmem [shape: f32[16,32,24], index: 15, kind: input, shape index: {}]   ;;  %s2524_s18 = inlined_call_operand.vmem [shape: f32[32,2], index: 18, kind: output, shape index: {}]  }
   0x1   :  { %2526 = sst [smem:[#allocation2_spill]] %s2506_s7  ;;  %1794 = vmatprep.subr.mxu0 %v1904_v0  ;;  %1800 = vmatprep.mubr.msk.f32.mxu0 %vm1905_vm0, %v1904_v0  ;;  %v1637_v5 = vld [vmem:[%s2509_s2] ss:$0 sm:$0xff]  ;;  %v1906_v10 = vmov 0   ;;  %v322_v12 = vld [vmem:[%s2511_s4 + $0x8] sm:$0xff]  ;;  %v1508_v17 = vld [vmem:[%s2515_s16 + $0x10] sm:$0xff] }
   0x2   :  { %2527 = sst [smem:[#allocation3_spill]] %s2507_s0  ;;  %v156_v9 = vld [vmem:[%s2510_s3] sm:$0xff]  ;;  %1902 = vset.pattern.permute.xlu0 %v1906_v10  ;;  %1903 = vset.pattern.permute.xlu1 %v1906_v10  ;;  %v157_v19 = vld [vmem:[%s2510_s3 + $0x8] sm:$0xff]  ;;  %v1638_v20 = vld [vmem:[%s2510_s3 + $0x10] sm:$0xff]  ;;  %vm423_vm3 = vcmask 130048   ;;  %vm1627_vm4 = vcmask 15360  }
   0x3   :  { %2528 = sst [smem:[#allocation4_spill]] %s2508_s1  ;;  %1805 = vmatprep.mubr.msk.f32.mxu1 %vm158_vm2, %v156_v9  ;;  %v321_v11 = vld [vmem:[%s2511_s4] sm:$0xff]  ;;  %v1639_v22 = vld [vmem:[%s2510_s3 + $0x18] sm:$0xff]  ;;  %v587_v37 = vld [vmem:[%s2517_s6 + $0x8] sm:$0xff] }
   0x4   :  { %s2529_s29 = sld [smem:[#allocation2_spill]]  ;;  %325 = vperm.xlu0 %1902, %v321_v11   ;;  %v604_v13 = vld [vmem:[%s2512_s9] sm:$0xff]  ;;  %v605_v38 = vld [vmem:[%s2512_s9 + $0x8] sm:$0xff]  ;;  %v1509_v42 = vld [vmem:[%s2515_s16 + $0x18] sm:$0xff] }
   0x5   :  { %s2530_s20 = sld [smem:[#allocation3_spill]]  ;;  %v952_v14 = vld [vmem:[%s2513_s11] sm:$0xff]  ;;  %v953_v39 = vld [vmem:[%s2513_s11 + $0x8] sm:$0xff]  ;;  %v1645_v46 = vld [vmem:[%s2516_s5 + $0x10] sm:$0xff] }
   0x6   :  { %s2531_s1 = sld [smem:[#allocation4_spill]]  ;;  %v1216_v15 = vld [vmem:[%s2514_s13] sm:$0xff]  ;;  %v1217_v40 = vld [vmem:[%s2514_s13 + $0x8] sm:$0xff]  ;;  %v1646_v47 = vld [vmem:[%s2516_s5 + $0x18] sm:$0xff] }
   0x7   :  { %v1506_v16 = vld [vmem:[%s2515_s16] sm:$0xff]  ;;  %v1507_v41 = vld [vmem:[%s2515_s16 + $0x8] sm:$0xff]  ;;  %v706_v50 = vld [vmem:[%s2519_s14 + $0x10] sm:$0xff] }
   0x8   :  { %330 = vperm.xlu0 %1902, %v322_v12   ;;  %v421_v35 = vld [vmem:[%s2516_s5] sm:$0xff]  ;;  %v422_v45 = vld [vmem:[%s2516_s5 + $0x8] sm:$0xff] }
   0x9   :  { %v586_v36 = vld [vmem:[%s2517_s6] sm:$0xff]  ;;  %v603_v49 = vld [vmem:[%s2518_s8 + $0x8] sm:$0xff] }
   0xa   :  { %v81_v1 = vld [vmem:[%s2529_s29 + $0x10] sm:$0xff]  ;;  %v80_v2 = vld [vmem:[%s2529_s29 + $0x8] sm:$0xff]  ;;  %v79_v6 = vld [vmem:[%s2529_s29] sm:$0xff]  ;;  %590 = vperm.xlu1 %1903, %v586_v36  }
   0xb   :  { %1795 = vmatpush3.msra.mxu0 %v81_v1  ;;  %v59_v3 = vld [vmem:[%s2530_s20] sm:$0xff]  ;;  %v705_v51 = vld [vmem:[%s2519_s14 + $0x8] sm:$0xff] }
   0xc   :  { %v1636_v4 = vld [vmem:[%s2531_s1] ss:$0 sm:$0xff]  ;;  %1796 = vmatprep.subr.mxu0 %v1904_v0  ;;  %608 = vperm.xlu0 %1902, %v604_v13   ;;  %v1504_v36 = vld [vmem:[%s2522_s17 + $0x8] sm:$0xff] }
   0xd   :  { %v67_v7 = vmul.f32 %v1636_v4, %v59_v3  ;;  %1797 = vmatpush3.msra.mxu0 %v80_v2  ;;  %v602_v48 = vld [vmem:[%s2518_s8] sm:$0xff] }
   0xe   :  { %1798 = vmatprep.subr.mxu0 %v1904_v0  ;;  %595 = vperm.xlu1 %1903, %v587_v37   ;;  %v704_v52 = vld [vmem:[%s2519_s14] sm:$0xff] }
   0xf   :  { %v2020_v8 = vadd.f32 %v1637_v5, %v67_v7  ;;  %1799 = vmatpush3.msra.mxu0 %v79_v6  ;;  %v788_v11 = vld [vmem:[%s2520_s10] sm:$0xff] }
  0x10   :  { %1813 = vmatprep.subr.mxu0 %v81_v1  ;;  %956 = vperm.xlu0 %1902, %v952_v14   ;;  %v789_v14 = vld [vmem:[%s2520_s10 + $0x8] sm:$0xff]  ;;  %v1503_v37 = vld [vmem:[%s2522_s17] sm:$0xff] }
  0x11   :  { %1801 = vmatmul.mubr.msk.f32.vlgmr.msra.gmra.mxu0 %vm82_vm1, %v2020_v8 }
  0x12   :  { %1814 = vmatpush3.msra.mxu0 %v81_v1  ;;  %613 = vperm.xlu1 %1903, %v605_v38  }
  0x13   :  { %1815 = vmatprep.subr.mxu0 %v80_v2 }
  0x14   :  { %1816 = vmatpush3.msra.mxu0 %v80_v2  ;;  %1220 = vperm.xlu0 %1902, %v1216_v15   ;;  %v1655_v15 = vld [vmem:[%s2520_s10 + $0x10] sm:$0xff] }
  0x15   :  { %1817 = vmatprep.subr.mxu0 %v79_v6 }
  0x16   :  { %1818 = vmatpush3.msra.mxu0 %v79_v6  ;;  %961 = vperm.xlu1 %1903, %v953_v39  }
  0x18   :  { %1512 = vperm.xlu0 %1902, %v1506_v16   ;;  %v1656_v16 = vld [vmem:[%s2520_s10 + $0x18] sm:$0xff] }
  0x1a   :  { %1225 = vperm.xlu1 %1903, %v1217_v40  }
  0x1c   :  { %1522 = vperm.xlu0 %1902, %v1508_v17  }
  0x1e   :  { %1517 = vperm.xlu1 %1903, %v1507_v41  }
  0x22   :  { %1527 = vperm.xlu1 %1903, %v1509_v42  }
  0x7f   :  { %v326_v24 = vpop.permute.xlu0 %325 }
  0x83   :  { %v331_v29 = vpop.permute.xlu0 %330 }
  0x85   :  { %v591_v53 = vpop.permute.xlu1 %590 }
  0x87   :  { %v609_v3 = vpop.permute.xlu0 %608 }
  0x89   :  { %v596_v55 = vpop.permute.xlu1 %595 }
  0x8d   :  { %v614_v62 = vpop.permute.xlu1 %613 }
  0xd1   :  { %v152_v18 = vpop.f32.mrf.mxu0 }
  0xd2   :  { %1803 = vmatprep.subr.mxu1 %v152_v18 }
  0xd3   :  { %v1802_v21 = vpop.f32.mrf.mxu0  ;;  %1804 = vmatpush3.msra.mxu1 %v152_v18 }
  0xd4   :  { %1806 = vmatmul.mubr.msk.f32.vlgmr.msra.gmra.mxu1 %vm158_vm2, %v157_v19  ;;  %1808 = vmatprep.subr.mxu1 %v2020_v8  ;;  %v962_v21 = vpop.permute.xlu1 %961 }
  0xd5   :  { %1809 = vmatpush3.msra.mxu1 %v2020_v8  ;;  %1810 = vmatprep.mubr.msk.f32.mxu1 %vm158_vm2, %v1638_v20 }
  0xd8   :  { %1811 = vmatmul.mubr.msk.f32.vlgmr.msra.gmra.mxu1 %vm158_vm2, %v1639_v22 }
  0xd9   :  { %1826 = vmatprep.mubr.msk.f32.mxu1 %vm423_vm3, %v421_v35  ;;  %v1505_v35 = vld [vmem:[%s2522_s17 + $0x10] sm:$0xff] }
 0x194   :  { %v1807_v23 = vpop.f32.mrf.mxu1 }
 0x196   :  { %v231_v25 = vpop.f32.mrf.mxu1 }
 0x198   :  { %v1812_v26 = vpop.f32.mrf.mxu1 }
 0x199   :  { %v318_v27 = vadd.f32 %v1812_v26, %v1807_v23 }
 0x19a   :  { %v312_v28 = vpop.f32.mrf.mxu1 }
 0x19b   :  { %v313_v30 = vadd.f32 %v312_v28, %v231_v25  ;;  %v334_v31 = vadd.f32 %v331_v29, %v318_v27  ;;  %v957_v25 = vpop.permute.xlu0 %956  ;;  %v1663_v29 = vld [vmem:[%s2521_s12 + $0x10] sm:$0xff] }
 0x19d   :  { %v333_v32 = vadd.f32 %v326_v24, %v313_v30  ;;  %v336_v34 = vmax.f32 %v334_v31, 0.0  ;;  %v1664_v30 = vld [vmem:[%s2521_s12 + $0x18] sm:$0xff]  ;;  %v1052_v31 = vld [vmem:[%s2521_s12] sm:$0xff] }
 0x19f   :  { %v335_v33 = vmax.f32 %v333_v32, 0.0 }
 0x1a1   :  { %1819 = vmatprep.mubr.msk.f32.mxu0 %vm82_vm1, %v335_v33 }
 0x1a2   :  { %1820 = vmatmul.mubr.msk.f32.vlgmr.msra.gmra.mxu0 %vm82_vm1, %v336_v34 }
 0x1a3   :  { %1854 = vmatprep.mubr.msk.f32.mxu0 %vm423_vm3, %v788_v11 }
 0x262   :  { %v1821_v43 = vpop.f32.mrf.mxu0 }
 0x263   :  { %1822 = vmatprep.subr.mxu1 %v1821_v43 }
 0x264   :  { %v412_v44 = vpop.f32.mrf.mxu0  ;;  %1823 = vmatpush3.msra.mxu1 %v1821_v43 }
 0x265   :  { %1824 = vmatprep.subr.mxu1 %v412_v44 }
 0x266   :  { %1825 = vmatpush3.msra.mxu1 %v412_v44  ;;  %v1240_v44 = vlaneseq }
 0x267   :  { %1827 = vmatmul.mubr.msk.f32.vlgmr.msra.gmra.mxu1 %vm423_vm3, %v422_v45  ;;  %1829 = vmatprep.subr.mxu1 %v336_v34  ;;  %v1221_v45 = vpop.permute.xlu0 %1220 }
 0x268   :  { %1830 = vmatpush3.msra.mxu1 %v336_v34  ;;  %1833 = vmatprep.mubr.msk.f32.mxu1 %vm423_vm3, %v1645_v46  ;;  %v1053_v34 = vld [vmem:[%s2521_s12 + $0x8] sm:$0xff]  ;;  %v1226_v46 = vpop.permute.xlu1 %1225 }
 0x269   :  { %1831 = vmatprep.subr.mxu1 %v335_v33 }
 0x26a   :  { %1832 = vmatpush3.msra.mxu1 %v335_v33 }
 0x26b   :  { %1834 = vmatmul.mubr.msk.f32.vlgmr.msra.gmra.mxu1 %vm423_vm3, %v1646_v47  ;;  %1836 = vmatprep.subr.mxu1 %v2020_v8 }
 0x26c   :  { %1837 = vmatpush3.msra.mxu1 %v2020_v8  ;;  %1838 = vmatprep.mubr.msk.f32.mxu1 %vm158_vm2, %v602_v48 }
 0x26d   :  { %1841 = vmatprep.subr.mxu1 %v706_v50 }
 0x26f   :  { %1839 = vmatmul.mubr.msk.f32.vlgmr.msra.gmra.mxu1 %vm158_vm2, %v603_v49 }
 0x270   :  { %1842 = vmatpush3.msra.mxu1 %v706_v50 }
 0x271   :  { %1843 = vmatprep.subr.mxu1 %v705_v51 }
 0x272   :  { %1844 = vmatpush3.msra.mxu1 %v705_v51 }
 0x273   :  { %1845 = vmatprep.subr.mxu1 %v704_v52 }
 0x274   :  { %1846 = vmatpush3.msra.mxu1 %v704_v52 }
 0x275   :  { %1864 = vmatprep.subr.mxu1 %v706_v50 }
 0x327   :  { %v1828_v54 = vpop.f32.mrf.mxu1 }
 0x329   :  { %v496_v56 = vpop.f32.mrf.mxu1 }
 0x32b   :  { %v1835_v57 = vpop.f32.mrf.mxu1 }
 0x32c   :  { %v583_v58 = vadd.f32 %v1835_v57, %v1828_v54  ;;  %v1236_v57 = vld [vmem:[%s2523_s15] sm:$0xff] }
 0x32d   :  { %v577_v59 = vpop.f32.mrf.mxu1 }
 0x32e   :  { %v599_v60 = vadd.f32 %v596_v55, %v583_v58  ;;  %v578_v61 = vadd.f32 %v577_v59, %v496_v56  ;;  %v1671_v58 = vld [vmem:[%s2523_s15 + $0x20] sm:$0xff] }
 0x32f   :  { %v1840_v63 = vpop.f32.mrf.mxu1 }
 0x330   :  { %v601_v0 = vmax.f32 %v599_v60, 0.0  ;;  %v598_v1 = vadd.f32 %v591_v53, %v578_v61  ;;  %v694_v2 = vadd.f32 %v1840_v63, %v614_v62 }
 0x331   :  { %v688_v4 = vpop.f32.mrf.mxu1 }
 0x332   :  { %v600_v5 = vmax.f32 %v598_v1, 0.0  ;;  %v689_v6 = vadd.f32 %v688_v4, %v609_v3  ;;  %v698_v7 = vadd.f32 %v694_v2, %v601_v0  ;;  %v1675_v0 = vld [vmem:[%s2523_s15 + $0x40] sm:$0xff] }
 0x334   :  { %v697_v8 = vadd.f32 %v689_v6, %v600_v5  ;;  %v2123_v10 = vmax.f32 %v698_v7, 0.0  ;;  %v1672_v5 = vld [vmem:[%s2523_s15 + $0x28] sm:$0xff]  ;;  %v1679_v6 = vld [vmem:[%s2523_s15 + $0x60] sm:$0xff] }
 0x336   :  { %v2121_v9 = vmax.f32 %v697_v8, 0.0 }
 0x338   :  { %1847 = vmatprep.mubr.msk.f32.mxu1 %vm82_vm1, %v2121_v9 }
 0x339   :  { %1848 = vmatmul.mubr.msk.f32.vlgmr.msra.gmra.mxu1 %vm82_vm1, %v2123_v10 }
 0x33a   :  { %1865 = vmatpush3.msra.mxu1 %v706_v50  ;;  %v2176_v50 = vshrl.u32 %v1240_v44, 7 }
 0x33b   :  { %1866 = vmatprep.subr.mxu1 %v705_v51 }
 0x33c   :  { %1867 = vmatpush3.msra.mxu1 %v705_v51  ;;  %v1242_v54 = vsub.s32 0, %v2176_v50  ;;  %v1255_v55 = vsub.s32 1, %v2176_v50  ;;  %v1272_v56 = vsub.s32 2, %v2176_v50  ;;  %v1289_v62 = vsub.s32 3, %v2176_v50 }
 0x33d   :  { %1868 = vmatprep.subr.mxu1 %v704_v52  ;;  %v1306_v4 = vsub.s32 4, %v2176_v50 }
 0x33e   :  { %1869 = vmatpush3.msra.mxu1 %v704_v52 }
 0x3f9   :  { %v1849_v12 = vpop.f32.mrf.mxu1 }
 0x3fa   :  { %1850 = vmatprep.subr.mxu0 %v1849_v12 }
 0x3fb   :  { %v779_v13 = vpop.f32.mrf.mxu1  ;;  %1851 = vmatpush3.msra.mxu0 %v1849_v12  ;;  %v1683_v12 = vld [vmem:[%s2523_s15 + $0x80] sm:$0xff] }
 0x3fc   :  { %1852 = vmatprep.subr.mxu0 %v779_v13 }
 0x3fd   :  { %1853 = vmatpush3.msra.mxu0 %v779_v13  ;;  %v1340_v13 = vsub.s32 6, %v2176_v50 }
 0x3fe   :  { %1855 = vmatmul.mubr.msk.f32.vlgmr.msra.gmra.mxu0 %vm423_vm3, %v789_v14  ;;  %1857 = vmatprep.subr.mxu0 %v2123_v10  ;;  %v1237_v14 = vld [vmem:[%s2523_s15 + $0x8] sm:$0xff] }
 0x3ff   :  { %1858 = vmatpush3.msra.mxu0 %v2123_v10  ;;  %1861 = vmatprep.mubr.msk.f32.mxu0 %vm423_vm3, %v1655_v15 }
 0x400   :  { %1859 = vmatprep.subr.mxu0 %v2121_v9 }
 0x401   :  { %1860 = vmatpush3.msra.mxu0 %v2121_v9 }
 0x402   :  { %1862 = vmatmul.mubr.msk.f32.vlgmr.msra.gmra.mxu0 %vm423_vm3, %v1656_v16 }
 0x403   :  { %1877 = vmatprep.mubr.msk.f32.mxu0 %vm423_vm3, %v1052_v31 }
 0x4be   :  { %v1856_v17 = vpop.f32.mrf.mxu0 }
 0x4c0   :  { %v862_v18 = vpop.f32.mrf.mxu0 }
 0x4c2   :  { %v1863_v19 = vpop.f32.mrf.mxu0 }
 0x4c3   :  { %v949_v20 = vadd.f32 %v1863_v19, %v1856_v17  ;;  %v1676_v19 = vld [vmem:[%s2523_s15 + $0x48] sm:$0xff] }
 0x4c4   :  { %v943_v22 = vpop.f32.mrf.mxu0 }
 0x4c5   :  { %v965_v23 = vadd.f32 %v962_v21, %v949_v20  ;;  %v944_v24 = vadd.f32 %v943_v22, %v862_v18  ;;  %v1687_v20 = vld [vmem:[%s2523_s15 + $0xa0] sm:$0xff]  ;;  %v1357_v21 = vsub.s32 7, %v2176_v50 }
 0x4c7   :  { %v967_v26 = vmax.f32 %v965_v23, 0.0  ;;  %v964_v27 = vadd.f32 %v957_v25, %v944_v24 }
 0x4c9   :  { %v966_v28 = vmax.f32 %v964_v27, 0.0  ;;  %1880 = vmatprep.subr.mxu1 %v967_v26  ;;  %v1673_v27 = vld [vmem:[%s2523_s15 + $0x30] sm:$0xff] }
 0x4cb   :  { %1870 = vmatprep.mubr.msk.f32.mxu1 %vm82_vm1, %v966_v28 }
 0x4cc   :  { %1871 = vmatmul.mubr.msk.f32.vlgmr.msra.gmra.mxu1 %vm82_vm1, %v967_v26 }
 0x4cd   :  { %1881 = vmatpush3.msra.mxu1 %v967_v26  ;;  %1884 = vmatprep.mubr.msk.f32.mxu1 %vm423_vm3, %v1663_v29  ;;  %v1238_v26 = vld [vmem:[%s2523_s15 + $0x10] sm:$0xff]  ;;  %v1691_v29 = vld [vmem:[%s2523_s15 + $0xc0] sm:$0xff] }
 0x4ce   :  { %1882 = vmatprep.subr.mxu1 %v966_v28 }
 0x4cf   :  { %1883 = vmatpush3.msra.mxu1 %v966_v28  ;;  %v1680_v28 = vld [vmem:[%s2523_s15 + $0x68] sm:$0xff] }
 0x4d0   :  { %1885 = vmatmul.mubr.msk.f32.vlgmr.msra.gmra.mxu1 %vm423_vm3, %v1664_v30 }
 0x58c   :  { %v1872_v32 = vpop.f32.mrf.mxu1 }
 0x58d   :  { %1873 = vmatprep.subr.mxu0 %v1872_v32 }
 0x58e   :  { %v1043_v33 = vpop.f32.mrf.mxu1  ;;  %1874 = vmatpush3.msra.mxu0 %v1872_v32 }
 0x58f   :  { %1875 = vmatprep.subr.mxu0 %v1043_v33 }
 0x590   :  { %1876 = vmatpush3.msra.mxu0 %v1043_v33  ;;  %v1886_v38 = vpop.f32.mrf.mxu1 }
 0x591   :  { %1878 = vmatmul.mubr.msk.f32.vlgmr.msra.gmra.mxu0 %vm423_vm3, %v1053_v34  ;;  %1887 = vmatprep.subr.mxu0 %v1505_v35 }
 0x592   :  { %1888 = vmatpush3.msra.mxu0 %v1505_v35  ;;  %v1207_v41 = vpop.f32.mrf.mxu1 }
 0x593   :  { %1889 = vmatprep.subr.mxu0 %v1504_v36 }
 0x594   :  { %1890 = vmatpush3.msra.mxu0 %v1504_v36 }
 0x595   :  { %1891 = vmatprep.subr.mxu0 %v1503_v37 }
 0x596   :  { %1892 = vmatpush3.msra.mxu0 %v1503_v37  ;;  %v1677_v37 = vld [vmem:[%s2523_s15 + $0x50] sm:$0xff] }
 0x651   :  { %v1879_v39 = vpop.f32.mrf.mxu0 }
 0x652   :  { %v1213_v40 = vadd.f32 %v1886_v38, %v1879_v39  ;;  %v1684_v38 = vld [vmem:[%s2523_s15 + $0x88] sm:$0xff]  ;;  %v1695_v39 = vld [vmem:[%s2523_s15 + $0xe0] sm:$0xff] }
 0x653   :  { %v1126_v42 = vpop.f32.mrf.mxu0 }
 0x654   :  { %v1208_v43 = vadd.f32 %v1207_v41, %v1126_v42  ;;  %v1229_v48 = vadd.f32 %v1226_v46, %v1213_v40 }
 0x656   :  { %v1228_v47 = vadd.f32 %v1221_v45, %v1208_v43  ;;  %v1231_v52 = vmax.f32 %v1229_v48, 0.0  ;;  %v1688_v45 = vld [vmem:[%s2523_s15 + $0xa8] sm:$0xff] }
 0x658   :  { %v1230_v49 = vmax.f32 %v1228_v47, 0.0  ;;  %v1233_v63 = vadd.f32 %v1231_v52, %v2123_v10  ;;  %v1323_v10 = vsub.s32 5, %v2176_v50  ;;  %v1699_v52 = vld [vmem:[%s2523_s15 + $0x100] sm:$0xff]  ;;  %v1716_v50 = vld [vmem:[%s2523_s15 + $0x188] sm:$0xff] }
 0x65a   :  { %v1232_v51 = vadd.f32 %v1230_v49, %v2121_v9  ;;  %v2214_v11 = vmax.f32 %v1233_v63, 0.0  ;;  %v1681_v49 = vld [vmem:[%s2523_s15 + $0x70] sm:$0xff] }
 0x65c   :  { %v1234_v53 = vmax.f32 %v1232_v51, 0.0  ;;  %v2255_v31 = vrot.slane %v2214_v11, %v1242_v54  ;;  %v2258_v32 = vrot.slane %v2214_v11, %v1255_v55  ;;  %v2272_v40 = vrot.slane %v2214_v11, %v1272_v56  ;;  %v1692_v51 = vld [vmem:[%s2523_s15 + $0xc8] sm:$0xff] }
 0x65d   :  { %v2275_v41 = vrot.slane %v2214_v11, %v1289_v62 }
 0x65e   :  { %v2188_v59 = vrot.slane %v1234_v53, %v1242_v54  ;;  %v2190_v60 = vrot.slane %v1234_v53, %v1255_v55  ;;  %v2192_v61 = vrot.slane %v1234_v53, %v1272_v56  ;;  %v2201_v3 = vrot.slane %v1234_v53, %v1289_v62  ;;  %v1696_v62 = vld [vmem:[%s2523_s15 + $0xe8] sm:$0xff] }
 0x65f   :  { %v2211_v9 = vrot.slane %v1234_v53, %v1306_v4  ;;  %v2225_v18 = vrot.slane %v1234_v53, %v1323_v10  ;;  %v2235_v24 = vrot.slane %v1234_v53, %v1340_v13  ;;  %v2252_v30 = vrot.slane %v1234_v53, %v1357_v21 }
 0x660   :  { %v1244_v1 = vmul.f32 %v2188_v59, %v1236_v57  ;;  %v1257_v2 = vmul.f32 %v1671_v58, %v2190_v60  ;;  %v1274_v8 = vmul.f32 %v1675_v0, %v2192_v61  ;;  %v1258_v15 = vmul.f32 %v1672_v5, %v2190_v60  ;;  %v1703_v5 = vld [vmem:[%s2523_s15 + $0x120] sm:$0xff] }
 0x661   :  { %v1291_v17 = vmul.f32 %v1679_v6, %v2201_v3  ;;  %v1308_v23 = vmul.f32 %v1683_v12, %v2211_v9  ;;  %v1245_v25 = vmul.f32 %v2188_v59, %v1237_v14  ;;  %v1275_v33 = vmul.f32 %v1676_v19, %v2192_v61  ;;  %v1689_v19 = vld [vmem:[%s2523_s15 + $0xb0] sm:$0xff] }
 0x662   :  { %v1261_v7 = vadd.f32 %v1257_v2, %v1244_v1  ;;  %v1325_v35 = vmul.f32 %v1687_v20, %v2225_v18  ;;  %v1246_v42 = vmul.f32 %v2188_v59, %v1238_v26  ;;  %v1259_v43 = vmul.f32 %v1673_v27, %v2190_v60  ;;  %v1685_v1 = vld [vmem:[%s2523_s15 + $0x90] sm:$0xff]  ;;  %v1239_v2 = vld [vmem:[%s2523_s15 + $0x18] sm:$0xff] }
 0x663   :  { %v1262_v36 = vadd.f32 %v1258_v15, %v1245_v25  ;;  %v1292_v44 = vmul.f32 %v1680_v28, %v2201_v3  ;;  %v1342_v47 = vmul.f32 %v1691_v29, %v2235_v24  ;;  %v2294_v53 = vrot.slane %v2214_v11, %v1306_v4  ;;  %v1678_v26 = vld [vmem:[%s2523_s15 + $0x58] sm:$0xff]  ;;  %v1715_v29 = vld [vmem:[%s2523_s15 + $0x180] sm:$0xff] }
 0x664   :  { %v1278_v16 = vadd.f32 %v1274_v8, %v1261_v7  ;;  %v2297_v54 = vrot.slane %v2214_v11, %v1323_v10  ;;  %v1263_v55 = vadd.f32 %v1259_v43, %v1246_v42  ;;  %v1276_v56 = vmul.f32 %v1677_v37, %v2192_v61  ;;  %v1674_v10 = vld [vmem:[%s2523_s15 + $0x38] sm:$0xff] }
 0x665   :  { %v1279_v48 = vadd.f32 %v1275_v33, %v1262_v36  ;;  %v1309_v57 = vmul.f32 %v1684_v38, %v2211_v9  ;;  %v1359_v63 = vmul.f32 %v1695_v39, %v2252_v30  ;;  %v1326_v4 = vmul.f32 %v1688_v45, %v2225_v18  ;;  %v1682_v42 = vld [vmem:[%s2523_s15 + $0x78] sm:$0xff] }
 0x666   :  { %v1295_v22 = vadd.f32 %v1291_v17, %v1278_v16  ;;  %v2316_v6 = vrot.slane %v2214_v11, %v1340_v13  ;;  %v1280_v7 = vadd.f32 %v1276_v56, %v1263_v55  ;;  %v1293_v8 = vmul.f32 %v1681_v49, %v2201_v3  ;;  %v1707_v16 = vld [vmem:[%s2523_s15 + $0x140] sm:$0xff]  ;;  %v1686_v56 = vld [vmem:[%s2523_s15 + $0x98] sm:$0xff] }
 0x667   :  { %v1296_v0 = vadd.f32 %v1292_v44, %v1279_v48  ;;  %v1343_v12 = vmul.f32 %v1692_v51, %v2235_v24  ;;  %v1376_v15 = vmul.f32 %v1699_v52, %v2255_v31  ;;  %v1711_v13 = vld [vmem:[%s2523_s15 + $0x160] sm:$0xff]  ;;  %v1360_v20 = vmul.f32 %v1696_v62, %v2252_v30  ;;  %v1708_v62 = vld [vmem:[%s2523_s15 + $0x148] sm:$0xff] }
 0x668   :  { %v1312_v34 = vadd.f32 %v1308_v23, %v1295_v22  ;;  %v1297_v22 = vadd.f32 %v1293_v8, %v1280_v7  ;;  %v1310_v23 = vmul.f32 %v1685_v1, %v2211_v9  ;;  %v1247_v25 = vmul.f32 %v2188_v59, %v1239_v2  ;;  %v1693_v59 = vld [vmem:[%s2523_s15 + $0xd0] sm:$0xff]  ;;  %v1719_v44 = vld [vmem:[%s2523_s15 + $0x1a0] sm:$0xff]  ;;  %v1690_v7 = vld [vmem:[%s2523_s15 + $0xb8] sm:$0xff] }
 0x669   :  { %v1313_v17 = vadd.f32 %v1309_v57, %v1296_v0  ;;  %v1393_v28 = vmul.f32 %v1703_v5, %v2258_v32  ;;  %v1410_v36 = vmul.f32 %v1707_v16, %v2272_v40  ;;  %v1427_v37 = vmul.f32 %v1711_v13, %v2275_v41 }
 0x66a   :  { %v1329_v46 = vadd.f32 %v1325_v35, %v1312_v34  ;;  %v1700_v34 = vld [vmem:[%s2523_s15 + $0x108] sm:$0xff]  ;;  %v1260_v35 = vmul.f32 %v1674_v10, %v2190_v60  ;;  %v1314_v38 = vadd.f32 %v1310_v23, %v1297_v22  ;;  %v1327_v39 = vmul.f32 %v1689_v19, %v2225_v18  ;;  %v1723_v10 = vld [vmem:[%s2523_s15 + $0x1c0] sm:$0xff]  ;;  %v1694_v22 = vld [vmem:[%s2523_s15 + $0xd8] sm:$0xff] }
 0x66b   :  { %v1330_v33 = vadd.f32 %v1326_v4, %v1313_v17  ;;  %v1704_v60 = vld [vmem:[%s2523_s15 + $0x128] sm:$0xff]  ;;  %v1277_v48 = vmul.f32 %v1678_v26, %v2192_v61  ;;  %v1444_v49 = vmul.f32 %v1715_v29, %v2294_v53  ;;  %v1377_v51 = vmul.f32 %v1700_v34, %v2255_v31  ;;  %v1701_v61 = vld [vmem:[%s2523_s15 + $0x110] sm:$0xff]  ;;  %v1698_v34 = vld [vmem:[%s2523_s15 + $0xf8] sm:$0xff] }
 0x66c   :  { %v1346_v58 = vadd.f32 %v1342_v47, %v1329_v46  ;;  %v1697_v46 = vld [vmem:[%s2523_s15 + $0xf0] sm:$0xff]  ;;  %v1264_v47 = vadd.f32 %v1260_v35, %v1247_v25  ;;  %v1331_v52 = vadd.f32 %v1327_v39, %v1314_v38  ;;  %v1344_v55 = vmul.f32 %v1693_v59, %v2235_v24  ;;  %v1727_v25 = vld [vmem:[%s2523_s15 + $0x1e0] sm:$0xff] }
 0x66d   :  { %v1347_v45 = vadd.f32 %v1343_v12, %v1330_v33  ;;  %v1294_v0 = vmul.f32 %v1682_v42, %v2201_v3  ;;  %v1461_v1 = vmul.f32 %v1719_v44, %v2297_v54  ;;  %v1394_v2 = vmul.f32 %v1704_v60, %v2258_v32  ;;  %v1712_v3 = vld [vmem:[%s2523_s15 + $0x168] sm:$0xff] }
 0x66e   :  { %v1363_v14 = vadd.f32 %v1359_v63, %v1346_v58  ;;  %v1281_v63 = vadd.f32 %v1277_v48, %v1264_v47  ;;  %v1348_v4 = vadd.f32 %v1344_v55, %v1331_v52  ;;  %v1361_v5 = vmul.f32 %v1697_v46, %v2252_v30  ;;  %v1717_v47 = vld [vmem:[%s2523_s15 + $0x190] sm:$0xff] }
 0x66f   :  { %v1364_v58 = vadd.f32 %v1360_v20, %v1347_v45  ;;  %v1311_v16 = vmul.f32 %v1686_v56, %v2211_v9  ;;  %v2398_v13 = vrot.slane %v2214_v11, %v1357_v21  ;;  %v1411_v17 = vmul.f32 %v1708_v62, %v2272_v40  ;;  %v1709_v11 = vld [vmem:[%s2523_s15 + $0x150] sm:$0xff]  ;;  %v1702_v45 = vld [vmem:[%s2523_s15 + $0x118] sm:$0xff] }
 0x670   :  { %v1380_v27 = vadd.f32 %v1376_v15, %v1363_v14  ;;  %v1705_v14 = vld [vmem:[%s2523_s15 + $0x130] sm:$0xff]  ;;  %v1298_v15 = vadd.f32 %v1294_v0, %v1281_v63  ;;  %v1365_v19 = vadd.f32 %v1361_v5, %v1348_v4  ;;  %v1378_v20 = vmul.f32 %v1701_v61, %v2255_v31  ;;  %v1706_v56 = vld [vmem:[%s2523_s15 + $0x138] sm:$0xff]  ;;  %v1728_v63 = vld [vmem:[%s2523_s15 + $0x1e8] sm:$0xff] }
 0x671   :  { %v1381_v12 = vadd.f32 %v1377_v51, %v1364_v58  ;;  %v1328_v26 = vmul.f32 %v1690_v7, %v2225_v18  ;;  %v1395_v33 = vmul.f32 %v1705_v14, %v2258_v32  ;;  %v1713_v18 = vld [vmem:[%s2523_s15 + $0x170] sm:$0xff]  ;;  %v1345_v38 = vmul.f32 %v1694_v22, %v2235_v24  ;;  %v1724_v51 = vld [vmem:[%s2523_s15 + $0x1c8] sm:$0xff]  ;;  %v1718_v22 = vld [vmem:[%s2523_s15 + $0x198] sm:$0xff] }
 0x672   :  { %v1397_v43 = vadd.f32 %v1393_v28, %v1380_v27  ;;  %v1315_v21 = vadd.f32 %v1311_v16, %v1298_v15  ;;  %v1478_v27 = vmul.f32 %v1723_v10, %v2316_v6  ;;  %v1428_v28 = vmul.f32 %v1712_v3, %v2275_v41  ;;  %v1721_v62 = vld [vmem:[%s2523_s15 + $0x1b0] sm:$0xff]  ;;  %v1714_v3 = vld [vmem:[%s2523_s15 + $0x178] sm:$0xff] }
 0x673   :  { %v1398_v9 = vadd.f32 %v1394_v2, %v1381_v12  ;;  %v1382_v29 = vadd.f32 %v1378_v20, %v1365_v19  ;;  %v1495_v39 = vmul.f32 %v1727_v25, %v2398_v13  ;;  %v1445_v42 = vmul.f32 %v1716_v50, %v2294_v53  ;;  %v1710_v2 = vld [vmem:[%s2523_s15 + $0x158] sm:$0xff]  ;;  %v1729_v16 = vld [vmem:[%s2523_s15 + $0x1f0] sm:$0xff] }
 0x674   :  { %v1414_v57 = vadd.f32 %v1410_v36, %v1397_v43  ;;  %v1720_v36 = vld [vmem:[%s2523_s15 + $0x1a8] sm:$0xff]  ;;  %v1412_v44 = vmul.f32 %v1709_v11, %v2272_v40  ;;  %v1362_v24 = vmul.f32 %v1698_v34, %v2252_v30  ;;  %v1429_v55 = vmul.f32 %v1713_v18, %v2275_v41  ;;  %v1518_v18 = vpop.permute.xlu1 %1517 }
 0x675   :  { %v1415_v35 = vadd.f32 %v1411_v17, %v1398_v9  ;;  %v1399_v43 = vadd.f32 %v1395_v33, %v1382_v29  ;;  %v1379_v61 = vmul.f32 %v1702_v45, %v2255_v31  ;;  %v1479_v5 = vmul.f32 %v1724_v51, %v2316_v6  ;;  %v1725_v31 = vld [vmem:[%s2523_s15 + $0x1d0] sm:$0xff]  ;;  %v1730_v33 = vld [vmem:[%s2523_s15 + $0x1f8] sm:$0xff] }
 0x676   :  { %v1431_v8 = vadd.f32 %v1427_v37, %v1414_v57  ;;  %v1332_v37 = vadd.f32 %v1328_v26, %v1315_v21  ;;  %v1463_v12 = vmul.f32 %v1721_v62, %v2297_v54  ;;  %v1496_v15 = vmul.f32 %v1728_v63, %v2398_v13  ;;  %v1722_v21 = vld [vmem:[%s2523_s15 + $0x1b8] sm:$0xff] }
 0x677   :  { %v1432_v46 = vadd.f32 %v1428_v28, %v1415_v35  ;;  %v1416_v52 = vadd.f32 %v1412_v44, %v1399_v43  ;;  %v1413_v19 = vmul.f32 %v1710_v2, %v2272_v40  ;;  %v1430_v9 = vmul.f32 %v1714_v3, %v2275_v41  ;;  %v1726_v28 = vld [vmem:[%s2523_s15 + $0x1d8] sm:$0xff] }
 0x678   :  { %v1448_v23 = vadd.f32 %v1444_v49, %v1431_v8  ;;  %v1349_v48 = vadd.f32 %v1345_v38, %v1332_v37  ;;  %v1462_v49 = vmul.f32 %v1720_v36, %v2297_v54  ;;  %v1396_v8 = vmul.f32 %v1706_v56, %v2258_v32 }
 0x679   :  { %v1449_v58 = vadd.f32 %v1445_v42, %v1432_v46  ;;  %v1433_v0 = vadd.f32 %v1429_v55, %v1416_v52  ;;  %v1480_v32 = vmul.f32 %v1725_v31, %v2316_v6  ;;  %v1497_v11 = vmul.f32 %v1729_v16, %v2398_v13 }
 0x67a   :  { %v1465_v59 = vadd.f32 %v1461_v1, %v1448_v23  ;;  %v1366_v30 = vadd.f32 %v1362_v24, %v1349_v48  ;;  %v1446_v1 = vmul.f32 %v1717_v47, %v2294_v53  ;;  %v1447_v26 = vmul.f32 %v1718_v22, %v2294_v53 }
 0x67b   :  { %v1466_v4 = vadd.f32 %v1462_v49, %v1449_v58  ;;  %v1464_v41 = vmul.f32 %v1722_v21, %v2297_v54  ;;  %v1498_v53 = vmul.f32 %v1730_v33, %v2398_v13  ;;  %v1513_v54 = vpop.permute.xlu0 %1512 }
 0x67c   :  { %v1482_v60 = vadd.f32 %v1478_v27, %v1465_v59  ;;  %v1383_v7 = vadd.f32 %v1379_v61, %v1366_v30  ;;  %v1450_v10 = vadd.f32 %v1446_v1, %v1433_v0  ;;  %v1481_v59 = vmul.f32 %v1726_v28, %v2316_v6  ;;  %v1528_v6 = vpop.permute.xlu1 %1527 }
 0x67d   :  { %v1483_v14 = vadd.f32 %v1479_v5, %v1466_v4 }
 0x67e   :  { %v1499_v57 = vadd.f32 %v1495_v39, %v1482_v60  ;;  %v1400_v17 = vadd.f32 %v1396_v8, %v1383_v7  ;;  %v1467_v20 = vadd.f32 %v1463_v12, %v1450_v10 }
 0x67f   :  { %v1500_v23 = vadd.f32 %v1496_v15, %v1483_v14  ;;  %v1523_v44 = vpop.permute.xlu0 %1522 }
 0x680   :  { %1893 = vmatprep.mubr.msk.f32.mxu0 %vm82_vm1, %v1499_v57  ;;  %v1417_v25 = vadd.f32 %v1413_v19, %v1400_v17  ;;  %v1484_v50 = vadd.f32 %v1480_v32, %v1467_v20 }
 0x681   :  { %1894 = vmatmul.mubr.msk.f32.vlgmr.msra.gmra.mxu0 %vm82_vm1, %v1500_v23 }
 0x682   :  { %v1434_v40 = vadd.f32 %v1430_v9, %v1417_v25  ;;  %v1501_v27 = vadd.f32 %v1497_v11, %v1484_v50 }
 0x684   :  { %v1451_v29 = vadd.f32 %v1447_v26, %v1434_v40  ;;  %1896 = vmatprep.mubr.msk.f32.mxu0 %vm82_vm1, %v1501_v27 }
 0x686   :  { %v1468_v34 = vadd.f32 %v1464_v41, %v1451_v29 }
 0x688   :  { %v1485_v35 = vadd.f32 %v1481_v59, %v1468_v34 }
 0x68a   :  { %v1502_v36 = vadd.f32 %v1498_v53, %v1485_v35 }
 0x68c   :  { %1897 = vmatmul.mubr.msk.f32.gmra.mxu0 %vm82_vm1, %v1502_v36 }
 0x741   :  { %v1895_v37 = vpop.f32.mrf.mxu0 }
 0x742   :  { %v1614_v38 = vadd.f32 %v1895_v37, %v1518_v18 }
 0x743   :  { %v1608_v39 = vpop.f32.mrf.mxu0 }
 0x744   :  { %1629 = vst.msk [vmem:[%s2524_s18 + $0x8] sm:$0xff] %vm1627_vm4, %v1614_v38  ;;  %v1609_v42 = vadd.f32 %v1608_v39, %v1513_v54 }
 0x746   :  { %1628 = vst.msk [vmem:[%s2524_s18] sm:$0xff] %vm1627_vm4, %v1609_v42 }
 0x74c   :  { %v1898_v13 = vpop.f32.mrf.mxu0 }
 0x74d   :  { %v1624_v43 = vadd.f32 %v1898_v13, %v1528_v6 }
 0x74e   :  { %v1618_v45 = vpop.f32.mrf.mxu0 }
 0x74f   :  { %1631 = vst.msk [vmem:[%s2524_s18 + $0x18] sm:$0xff] %vm1627_vm4, %v1624_v43  ;;  %v1619_v60 = vadd.f32 %v1618_v45, %v1523_v44 }
 0x751   :  { %1630 = vst.msk [vmem:[%s2524_s18 + $0x10] sm:$0xff] %vm1627_vm4, %v1619_v60 }

</bundles_post_ra>
